<compile_context>
chip_gen: v7x
topology: tpu7x:2x2x1
jax: 0.10.0
libtpu: 0.0.40
codegen_flags: <defaults>
</compile_context>

<pallas_src>
import functools

import jax
import jax.numpy as jnp
from jax.experimental import pallas as pl
from jax.experimental.pallas import tpu as pltpu


def fused_conv_bn_relu_kernel(s_ref, w_ref, gb_ref, out_ref,
                              *, n_imgs, hw, hwp, eps):
    """Fused 3x3 conv (one matmul) + BatchNorm (batch stats) + ReLU.

    s_ref:   (9*Cin, N*HWp)  im2col patches (bf16 or f32), spatial on lanes,
                             each image's block lane-padded to HWp (mult. of 128)
    w_ref:   (Cout, 9*Cin)   conv weight, K order matches s_ref rows
    gb_ref:  (Cout, 2)       [:,0] = BN gamma, [:,1] = BN beta
    out_ref: (N, Cout, HWp)  output (crop + reshape to NCHW in the wrapper)
    """
    total = n_imgs * hwp

    # Whole 3x3 conv as a single MXU matmul (K = 9*Cin), f32 accumulation.
    # Conv bias intentionally omitted: BN's batch-mean subtraction cancels any
    # per-channel constant exactly, so the bias add is dead work.
    acc = jnp.dot(w_ref[...], s_ref[...],
                  preferred_element_type=jnp.float32)            # (Cout, N*HWp)

    # Mask column: 1.0 for real spatial positions, 0.0 for per-image lane pad.
    col = jax.lax.broadcasted_iota(jnp.int32, (total, 1), 0)
    colmask = jnp.where(col % hwp < hw, 1.0, 0.0).astype(jnp.float32)

    # BN batch statistics over (N, H, W) == the lane axis.  Row-sums are MXU
    # matmuls against the mask column (keeps the reduce off the XLU and folds
    # the padding mask in for free).  Two-pass (centered) variance.
    inv_cnt = 1.0 / float(n_imgs * hw)
    mean = jnp.dot(acc, colmask,
                   preferred_element_type=jnp.float32) * inv_cnt  # (Cout, 1)
    centered = acc - mean
    var = jnp.dot(centered * centered, colmask,
                  preferred_element_type=jnp.float32) * inv_cnt   # (Cout, 1)

    gamma = gb_ref[:, 0:1]
    beta = gb_ref[:, 1:2]
    scale = gamma * jax.lax.rsqrt(var + eps)                      # (Cout, 1)

    y = jnp.maximum(centered * scale + beta, 0.0)                 # (Cout, N*HWp)

    # Per-image stores: HWp % 128 == 0 -> static, aligned, unmasked lane-dense
    # stores of (Cout, HWp) slabs.
    for n in range(n_imgs):
        out_ref[n] = y[:, n * hwp:(n + 1) * hwp]


def block_forward(x_nchw, w_oihw, bias, gamma, beta, eps=1e-5,
                  operand_dtype=jnp.bfloat16):
    """Forward pass of Block: ReLU(BN(Conv2d(x, k=3, pad=1))) with batch stats."""
    N, Cin, H, W = x_nchw.shape
    Cout = w_oihw.shape[0]
    HW = H * W
    HWp = ((HW + 127) // 128) * 128          # lane-pad each image's spatial block

    x = x_nchw.astype(jnp.float32)
    xp = jnp.pad(x, ((0, 0), (0, 0), (1, 1), (1, 1)))            # "same" padding

    # im2col slab (9*Cin, N*HWp): pure layout/duplication, built by XLA so the
    # kernel sees a lane-dense, matmul-ready operand.  Cast to bf16 for the MXU
    # (f32 accumulation happens in the kernel).
    taps = [xp[:, :, kh:kh + H, kw:kw + W]                       # (N, Cin, H, W)
            for kh in range(3) for kw in range(3)]
    s = jnp.stack(taps, axis=0)                                  # (9, N, Cin, H, W)
    s = jnp.transpose(s, (0, 2, 1, 3, 4))                        # (9, Cin, N, H, W)
    s = s.reshape(9 * Cin, N, HW)
    if HWp != HW:
        s = jnp.pad(s, ((0, 0), (0, 0), (0, HWp - HW)))          # zero pad columns
    s = s.reshape(9 * Cin, N * HWp).astype(operand_dtype)

    # Weight with matching K ordering (kh, kw, ci).
    wmat = jnp.transpose(w_oihw.astype(jnp.float32), (0, 2, 3, 1))
    wmat = wmat.reshape(Cout, 9 * Cin).astype(operand_dtype)

    # Conv bias is NOT passed to the kernel: BN (training mode) subtracts the
    # batch mean, which absorbs any per-channel constant exactly.
    del bias

    # Single fused per-channel parameter operand: [:,0]=gamma, [:,1]=beta.
    gb = jnp.stack([gamma.astype(jnp.float32), beta.astype(jnp.float32)], axis=1)

    cost = pl.CostEstimate(
        flops=2 * Cout * (9 * Cin) * N * HWp        # conv matmul
              + 2 * 2 * Cout * N * HWp              # mean / var MXU reduces
              + 6 * Cout * N * HWp,                 # center / square / affine / relu
        transcendentals=Cout,                       # rsqrt per channel
        bytes_accessed=(s.size * s.dtype.itemsize
                        + wmat.size * wmat.dtype.itemsize
                        + gb.size * gb.dtype.itemsize
                        + N * Cout * HWp * 4),
    )

    vmem = pl.BlockSpec(memory_space=pltpu.MemorySpace.VMEM)     # whole array in VMEM
    y = pl.pallas_call(
        functools.partial(fused_conv_bn_relu_kernel,
                          n_imgs=N, hw=HW, hwp=HWp, eps=float(eps)),
        out_shape=jax.ShapeDtypeStruct((N, Cout, HWp), jnp.float32),
        in_specs=[vmem, vmem, vmem],
        out_specs=vmem,
        cost_estimate=cost,
    )(s, wmat, gb)

    # Crop lane padding (no-op when HWp == HW) and reshape to NCHW (free:
    # identical row-major layout).
    return y[:, :, :HW].reshape(N, Cout, H, W)


# Pure-JAX reference for correctness checking (includes the conv bias).
def block_forward_ref(x_nchw, w_oihw, bias, gamma, beta, eps=1e-5):
    conv = jax.lax.conv_general_dilated(
        x_nchw.astype(jnp.float32), w_oihw.astype(jnp.float32),
        window_strides=(1, 1), padding="SAME",
        dimension_numbers=("NCHW", "OIHW", "NCHW"))
    conv = conv + bias.reshape(1, -1, 1, 1)
    mean = conv.mean(axis=(0, 2, 3), keepdims=True)
    var = ((conv - mean) ** 2).mean(axis=(0, 2, 3), keepdims=True)
    norm = (conv - mean) / jnp.sqrt(var + eps)
    out = norm * gamma.reshape(1, -1, 1, 1) + beta.reshape(1, -1, 1, 1)
    return jnp.maximum(out, 0.0)


def _make_inputs(key, n, cin, h, w, cout):
    kx, kw, kb, kg, kbeta = jax.random.split(key, 5)
    x = jax.random.normal(kx, (n, cin, h, w), dtype=jnp.float32)
    wgt = jax.random.normal(kw, (cout, cin, 3, 3), dtype=jnp.float32) * (
        (2.0 / (cin * 9)) ** 0.5)
    b = jax.random.normal(kb, (cout,), dtype=jnp.float32) * 0.1
    gamma = 1.0 + 0.1 * jax.random.normal(kg, (cout,), dtype=jnp.float32)
    beta = 0.1 * jax.random.normal(kbeta, (cout,), dtype=jnp.float32)
    return x, wgt, b, gamma, beta


if __name__ == "__main__":
    # Case 1: Block(4, 8) on 2x4x16x16 (HW = 256, already lane-aligned).
    x, w, b, g, be = _make_inputs(jax.random.PRNGKey(0), 2, 4, 16, 16, 8)
    ref = block_forward_ref(x, w, b, g, be)

    # bf16 MXU operands (default path); f32 accumulation -> small quantization
    # error vs. the f32 reference, checked at 2e-2.
    out_bf16 = jax.block_until_ready(jax.jit(block_forward)(x, w, b, g, be))
    assert out_bf16.shape == ref.shape
    assert jnp.allclose(out_bf16, ref, atol=2e-2, rtol=2e-2), (
        float(jnp.max(jnp.abs(out_bf16 - ref))))

    # f32 operand path, checked at the original tight tolerance.
    out_f32 = jax.block_until_ready(
        jax.jit(functools.partial(block_forward, operand_dtype=jnp.float32))(
            x, w, b, g, be))
    assert jnp.allclose(out_f32, ref, atol=1e-3, rtol=1e-3), (
        float(jnp.max(jnp.abs(out_f32 - ref))))

    # Case 2: Block(3, 8) on 2x3x10x10 (HW = 100 -> lane-padded to 128);
    # exercises the padded-store + masked-statistics path.
    x2, w2, b2, g2, be2 = _make_inputs(jax.random.PRNGKey(1), 2, 3, 10, 10, 8)
    ref2 = block_forward_ref(x2, w2, b2, g2, be2)
    out2 = jax.block_until_ready(jax.jit(block_forward)(x2, w2, b2, g2, be2))
    assert out2.shape == ref2.shape
    assert jnp.allclose(out2, ref2, atol=2e-2, rtol=2e-2), (
        float(jnp.max(jnp.abs(out2 - ref2))))

    print("KERNEL_OK")
</pallas_src>

<mosaic_0001>
module attributes {stable_mosaic.version = 11 : i64} {
  func.func @fused_conv_bn_relu_kernel(%arg0: memref<36x512xbf16, #tpu.memory_space<vmem>>, %arg1: memref<8x36xbf16, #tpu.memory_space<vmem>>, %arg2: memref<8x2xf32, #tpu.memory_space<vmem>>, %arg3: memref<2x8x256xf32, #tpu.memory_space<vmem>>) attributes {dimension_semantics = [], scalar_prefetch = 0 : i64, scratch_operands = 0 : i64, tpu.core_type = #tpu.core_type<tc>} {
    %c0 = arith.constant 0 : index
    %c0_0 = arith.constant 0 : index
    %0 = vector.load %arg1[%c0, %c0_0] : memref<8x36xbf16, #tpu.memory_space<vmem>>, vector<8x36xbf16>
    %c0_1 = arith.constant 0 : index
    %c0_2 = arith.constant 0 : index
    %1 = vector.load %arg0[%c0_1, %c0_2] : memref<36x512xbf16, #tpu.memory_space<vmem>>, vector<36x512xbf16>
    %cst = arith.constant dense<0.000000e+00> : vector<8x512xf32>
    %2 = tpu.matmul %0, %1, %cst {dimension_numbers = #tpu.dot_dimension_numbers<[1], [0], [0], [1], [0, 0, 1, 1], [], []>} : vector<8x36xbf16>, vector<36x512xbf16>, vector<8x512xf32> -> vector<8x512xf32>
    %3 = tpu.iota {dimensions = array<i32: 0>} : vector<512x1xi32>
    %c256_i32 = arith.constant 256 : i32
    %c0_i32 = arith.constant 0 : i32
    %4 = arith.cmpi eq, %c256_i32, %c0_i32 : i32
    %c1_i32 = arith.constant 1 : i32
    %5 = arith.select %4, %c1_i32, %c256_i32 : i32
    %6 = vector.broadcast %5 : i32 to vector<512x1xi32>
    %7 = arith.remsi %3, %6 : vector<512x1xi32>
    %c0_i32_3 = arith.constant 0 : i32
    %8 = vector.broadcast %c0_i32_3 : i32 to vector<512x1xi32>
    %9 = arith.cmpi ne, %7, %8 : vector<512x1xi32>
    %c0_i32_4 = arith.constant 0 : i32
    %10 = vector.broadcast %c0_i32_4 : i32 to vector<512x1xi32>
    %11 = arith.cmpi slt, %7, %10 : vector<512x1xi32>
    %c0_i32_5 = arith.constant 0 : i32
    %12 = arith.cmpi slt, %5, %c0_i32_5 : i32
    %13 = vector.broadcast %12 : i1 to vector<512x1xi1>
    %14 = vector.broadcast %13 : vector<512x1xi1> to vector<512x1xi1>
    %15 = arith.xori %11, %14 : vector<512x1xi1>
    %16 = arith.andi %15, %9 : vector<512x1xi1>
    %17 = vector.broadcast %5 : i32 to vector<512x1xi32>
    %18 = arith.addi %7, %17 : vector<512x1xi32>
    %19 = arith.select %16, %18, %7 : vector<512x1xi1>, vector<512x1xi32>
    %c256_i32_6 = arith.constant 256 : i32
    %20 = vector.broadcast %c256_i32_6 : i32 to vector<512x1xi32>
    %21 = arith.cmpi slt, %19, %20 : vector<512x1xi32>
    %cst_7 = arith.constant 1.000000e+00 : f32
    %cst_8 = arith.constant 0.000000e+00 : f32
    %22 = vector.broadcast %cst_7 : f32 to vector<512x1xf32>
    %23 = vector.broadcast %cst_8 : f32 to vector<512x1xf32>
    %24 = arith.select %21, %22, %23 : vector<512x1xi1>, vector<512x1xf32>
    %cst_9 = arith.constant dense<0.000000e+00> : vector<8x1xf32>
    %25 = tpu.matmul %2, %24, %cst_9 {dimension_numbers = #tpu.dot_dimension_numbers<[1], [0], [0], [1], [0, 0, 1, 1], [], []>} : vector<8x512xf32>, vector<512x1xf32>, vector<8x1xf32> -> vector<8x1xf32>
    %cst_10 = arith.constant 0.001953125 : f32
    %26 = vector.broadcast %cst_10 : f32 to vector<8x1xf32>
    %27 = arith.mulf %25, %26 : vector<8x1xf32>
    %28 = vector.broadcast %27 : vector<8x1xf32> to vector<8x512xf32>
    %29 = arith.subf %2, %28 : vector<8x512xf32>
    %30 = arith.mulf %29, %29 : vector<8x512xf32>
    %cst_11 = arith.constant dense<0.000000e+00> : vector<8x1xf32>
    %31 = tpu.matmul %30, %24, %cst_11 {dimension_numbers = #tpu.dot_dimension_numbers<[1], [0], [0], [1], [0, 0, 1, 1], [], []>} : vector<8x512xf32>, vector<512x1xf32>, vector<8x1xf32> -> vector<8x1xf32>
    %cst_12 = arith.constant 0.001953125 : f32
    %32 = vector.broadcast %cst_12 : f32 to vector<8x1xf32>
    %33 = arith.mulf %31, %32 : vector<8x1xf32>
    %c0_13 = arith.constant 0 : index
    %c0_14 = arith.constant 0 : index
    %34 = vector.load %arg2[%c0_13, %c0_14] : memref<8x2xf32, #tpu.memory_space<vmem>>, vector<8x1xf32>
    %c0_15 = arith.constant 0 : index
    %c1 = arith.constant 1 : index
    %35 = vector.load %arg2[%c0_15, %c1] : memref<8x2xf32, #tpu.memory_space<vmem>>, vector<8x1xf32>
    %cst_16 = arith.constant 9.99999974E-6 : f32
    %36 = vector.broadcast %cst_16 : f32 to vector<8x1xf32>
    %37 = arith.addf %33, %36 : vector<8x1xf32>
    %38 = math.rsqrt %37 : vector<8x1xf32>
    %39 = arith.mulf %34, %38 : vector<8x1xf32>
    %40 = vector.broadcast %39 : vector<8x1xf32> to vector<8x512xf32>
    %41 = arith.mulf %29, %40 : vector<8x512xf32>
    %42 = vector.broadcast %35 : vector<8x1xf32> to vector<8x512xf32>
    %43 = arith.addf %41, %42 : vector<8x512xf32>
    %cst_17 = arith.constant 0.000000e+00 : f32
    %44 = vector.broadcast %cst_17 : f32 to vector<8x512xf32>
    %45 = arith.maximumf %43, %44 : vector<8x512xf32>
    %46 = vector.extract_strided_slice %45 {offsets = [0, 0], sizes = [8, 256], strides = [1, 1]} : vector<8x512xf32> to vector<8x256xf32>
    %c0_18 = arith.constant 0 : index
    %c0_19 = arith.constant 0 : index
    %c0_20 = arith.constant 0 : index
    %47 = vector.load %arg3[%c0_18, %c0_19, %c0_20] : memref<2x8x256xf32, #tpu.memory_space<vmem>>, vector<1x8x256xf32>
    %48 = vector.shape_cast %47 : vector<1x8x256xf32> to vector<8x256xf32>
    %49 = vector.shape_cast %46 : vector<8x256xf32> to vector<1x8x256xf32>
    tpu.vector_store %arg3[%c0_18, %c0_19, %c0_20], %49 {strides = array<i32>} : memref<2x8x256xf32, #tpu.memory_space<vmem>>, vector<1x8x256xf32>,
    %50 = vector.extract_strided_slice %45 {offsets = [0, 256], sizes = [8, 256], strides = [1, 1]} : vector<8x512xf32> to vector<8x256xf32>
    %c1_21 = arith.constant 1 : index
    %c0_22 = arith.constant 0 : index
    %c0_23 = arith.constant 0 : index
    %51 = vector.load %arg3[%c1_21, %c0_22, %c0_23] : memref<2x8x256xf32, #tpu.memory_space<vmem>>, vector<1x8x256xf32>
    %52 = vector.shape_cast %51 : vector<1x8x256xf32> to vector<8x256xf32>
    %53 = vector.shape_cast %50 : vector<8x256xf32> to vector<1x8x256xf32>
    tpu.vector_store %arg3[%c1_21, %c0_22, %c0_23], %53 {strides = array<i32>} : memref<2x8x256xf32, #tpu.memory_space<vmem>>, vector<1x8x256xf32>,
    return
  }
}

</mosaic_0001>

<bundles_post_ra>
// kernel: block_forward.1
= control target key start
LH: loop header
LB: loop body
LE: loop exit
PB: predicated region body
PF: predicated region fallthrough
CT: control target
= control target key end

     0   :  { %v1712_v1 = vmov 0   ;;  %vm80_vm0 = vcmask 1041408   ;;  %vm76_vm1 = vcmask 293888   ;;  %v1713_v18 = vmov 1.0|1.0   ;;  %s1847_s0 = inlined_call_operand.vmem [shape: bf16[36,512], index: 0, kind: input, shape index: {}]   ;;  %s1848_s1 = inlined_call_operand.vmem [shape: bf16[8,36], index: 1, kind: input, shape index: {}]   ;;  %s1849_s2 = inlined_call_operand.vmem [shape: f32[8,2], index: 2, kind: input, shape index: {}]   ;;  %s1850_s3 = inlined_call_operand.vmem [shape: f32[2,8,256], index: 3, kind: output, shape index: {}]  }
   0x1   :  { %v1694_v0 = vld [vmem:[%s1847_s0 + $0x4] ss:$16 sps:$4 sm:$0xff]   ;;  %125 = vmatprep.mubr.bf16.mxu0 %v1712_v1  ;;  %166 = vmatprep.mubr.bf16.mxu1 %v1712_v1  ;;  %v1696_v2 = vld [vmem:[%s1847_s0 + $0xc] ss:$16 sps:$4 sm:$0xff]   ;;  %v1698_v3 = vld [vmem:[%s1847_s0] ss:$16 sps:$4 sm:$0xff]  }
   0x2   :  { %1691 = vset.pattern.permute.xlu0 %v1712_v1  ;;  %93 = vmatprep.subr.bf16.mxu0 %v1694_v0  ;;  %v1699_v4 = vld [vmem:[%s1847_s0 + $0x8] ss:$16 sps:$4 sm:$0xff]   ;;  %v1700_v5 = vld [vmem:[%s1847_s0 + $0x24] ss:$16 sps:$4 sm:$0xff]   ;;  %v1702_v6 = vld [vmem:[%s1847_s0 + $0x2c] ss:$16 sps:$4 sm:$0xff]  }
   0x3   :  { %134 = vmatprep.subr.bf16.mxu1 %v1696_v2  ;;  %94 = vmatpush1.bf16.msra.mxu0 %v1698_v3  ;;  %v1704_v7 = vld [vmem:[%s1847_s0 + $0x20] ss:$16 sps:$4 sm:$0xff]   ;;  %v1705_v8 = vld [vmem:[%s1847_s0 + $0x28] ss:$16 sps:$4 sm:$0xff]   ;;  %v1714_v45 = vmov 1  }
   0x4   :  { %135 = vmatpush1.bf16.msra.mxu1 %v1699_v4  ;;  %95 = vmatprep.subr.bf16.mxu0 %v1700_v5  ;;  %v24_v9 = vld [vmem:[%s1847_s0 + $0x40] sm:$0x33]  ;;  %v25_v10 = vld [vmem:[%s1847_s0 + $0x48] sm:$0x33] }
   0x5   :  { %136 = vmatprep.subr.bf16.mxu1 %v1702_v6  ;;  %v1475_v11 = vcombine.high %v24_v9, %v24_v9  ;;  %v1477_v12 = vcombine.high %v25_v10, %v25_v10  ;;  %v1474_v13 = vcombine.low %v24_v9, %v24_v9  ;;  %v1476_v14 = vcombine.low %v25_v10, %v25_v10  ;;  %v15_v17 = vld [vmem:[%s1848_s1] sm:$0xf] }
   0x6   :  { %v1431_v44 = vld [vmem:[%s1849_s2] sm:$0xff]  ;;  %1692 = vset.pattern.permute.xlu1 %v1714_v45 }
   0x7   :  { %96 = vmatpush1.bf16.msra.mxu0 %v1704_v7  ;;  %v82_v15 = vsel %vm80_vm0, %v1474_v13, 0  ;;  %v88_v16 = vsel %vm80_vm0, %v1476_v14, 0  ;;  %1446 = vperm.xlu1 %1692, %v1431_v44  }
   0x8   :  { %137 = vmatpush1.bf16.msra.mxu1 %v1705_v8  ;;  %1478 = vmatprep.subr.msk.bf16.mxu0 %vm80_vm0, %v1475_v11 }
   0x9   :  { %1480 = vmatprep.subr.msk.bf16.mxu1 %vm80_vm0, %v1477_v12 }
   0xb   :  { %98 = vmatpush1.bf16.msra.mxu0 %v82_v15 }
   0xc   :  { %139 = vmatpush1.bf16.msra.mxu1 %v88_v16  ;;  %1624 = vmatprep.subr.bf16.mxu0 %v1713_v18 }
   0xd   :  { %1640 = vmatprep.subr.bf16.mxu1 %v1713_v18 }
   0xe   :  { %1479 = vmatmul.mubr.msk.bf16.vlgmr.msra.gmra.mrb[0].mxu0 %vm76_vm1, %v15_v17 }
   0xf   :  { %1481 = vmatmul.mubr.msk.bf16.vlgmr.msra.gmra.mrb[0].mxu1 %vm76_vm1, %v15_v17  ;;  %1625 = vmatpush3.bf16.msra.mxu0 %v1713_v18 }
  0x10   :  { %1641 = vmatpush3.bf16.msra.mxu1 %v1713_v18  ;;  %1626 = vmatprep.subr.bf16.mxu0 %v1713_v18 }
  0x11   :  { %1642 = vmatprep.subr.bf16.mxu1 %v1713_v18 }
  0x13   :  { %1627 = vmatpush3.bf16.msra.mxu0 %v1713_v18 }
  0x14   :  { %1643 = vmatpush3.bf16.msra.mxu1 %v1713_v18  ;;  %1628 = vmatprep.subr.bf16.mxu0 %v1713_v18 }
  0x15   :  { %1644 = vmatprep.subr.bf16.mxu1 %v1713_v18 }
  0x17   :  { %1629 = vmatpush3.bf16.msra.mxu0 %v1713_v18 }
  0x18   :  { %1645 = vmatpush3.bf16.msra.mxu1 %v1713_v18  ;;  %1630 = vmatprep.subr.bf16.mxu0 %v1713_v18 }
  0x19   :  { %1646 = vmatprep.subr.bf16.mxu1 %v1713_v18 }
  0x1b   :  { %1631 = vmatpush3.bf16.msra.mxu0 %v1713_v18 }
  0x1c   :  { %1647 = vmatpush3.bf16.msra.mxu1 %v1713_v18  ;;  %1632 = vmatprep.subr.bf16.mxu0 %v1713_v18 }
  0x1d   :  { %1648 = vmatprep.subr.bf16.mxu1 %v1713_v18 }
  0x1f   :  { %1633 = vmatpush3.bf16.msra.mxu0 %v1713_v18 }
  0x20   :  { %1649 = vmatpush3.bf16.msra.mxu1 %v1713_v18  ;;  %1634 = vmatprep.subr.bf16.mxu0 %v1713_v18 }
  0x21   :  { %1650 = vmatprep.subr.bf16.mxu1 %v1713_v18 }
  0x23   :  { %1635 = vmatpush3.bf16.msra.mxu0 %v1713_v18 }
  0x24   :  { %1651 = vmatpush3.bf16.msra.mxu1 %v1713_v18  ;;  %1636 = vmatprep.subr.bf16.mxu0 %v1713_v18 }
  0x25   :  { %1652 = vmatprep.subr.bf16.mxu1 %v1713_v18 }
  0x27   :  { %1637 = vmatpush3.bf16.msra.mxu0 %v1713_v18 }
  0x28   :  { %1653 = vmatpush3.bf16.msra.mxu1 %v1713_v18  ;;  %1638 = vmatprep.subr.bf16.mxu0 %v1713_v18 }
  0x29   :  { %1654 = vmatprep.subr.bf16.mxu1 %v1713_v18 }
  0x2b   :  { %1639 = vmatpush3.bf16.msra.mxu0 %v1713_v18 }
  0x2c   :  { %1655 = vmatpush3.bf16.msra.mxu1 %v1713_v18  ;;  %1656 = vmatprep.subr.bf16.mxu0 %v1713_v18 }
  0x2d   :  { %1672 = vmatprep.subr.bf16.mxu1 %v1713_v18 }
  0x86   :  { %v1447_v58 = vpop.permute.xlu1 %1446 }
  0xe1   :  { %v127_v19 = vpop.f32.mrb[0].mxu0 }
  0xe2   :  { %v168_v20 = vpop.f32.mrb[0].mxu1  ;;  %v129_v21 = vpop.f32.mrb[1].mxu0 }
  0xe3   :  { %v170_v22 = vpop.f32.mrb[1].mxu1  ;;  %v131_v23 = vpop.f32.mrb[2].mxu0  ;;  %1200 = vmatprep.mubr.f32.mxu0 %v129_v21 }
  0xe4   :  { %v172_v24 = vpop.f32.mrb[2].mxu1  ;;  %1270 = vmatprep.mubr.f32.mxu1 %v170_v22  ;;  %v132_v25 = vpop.f32.mrb[3].mxu0  ;;  %1201 = vmatmul.mubr.f32.vlgmr.msra.gmra.mrb[4].mxu0 %v127_v19 }
  0xe5   :  { %v173_v26 = vpop.f32.mrb[3].mxu1  ;;  %1271 = vmatmul.mubr.f32.vlgmr.msra.gmra.mrb[4].mxu1 %v168_v20  ;;  %1657 = vmatpush3.bf16.msra.mxu0 %v1713_v18 }
  0xe6   :  { %1673 = vmatpush3.bf16.msra.mxu1 %v1713_v18  ;;  %1658 = vmatprep.subr.bf16.mxu0 %v1713_v18 }
  0xe7   :  { %1674 = vmatprep.subr.bf16.mxu1 %v1713_v18 }
  0xe9   :  { %1659 = vmatpush3.bf16.msra.mxu0 %v1713_v18 }
  0xea   :  { %1675 = vmatpush3.bf16.msra.mxu1 %v1713_v18  ;;  %1660 = vmatprep.subr.bf16.mxu0 %v1713_v18 }
  0xeb   :  { %1676 = vmatprep.subr.bf16.mxu1 %v1713_v18 }
  0xed   :  { %1661 = vmatpush3.bf16.msra.mxu0 %v1713_v18 }
  0xee   :  { %1677 = vmatpush3.bf16.msra.mxu1 %v1713_v18  ;;  %1662 = vmatprep.subr.bf16.mxu0 %v1713_v18 }
  0xef   :  { %1678 = vmatprep.subr.bf16.mxu1 %v1713_v18 }
  0xf1   :  { %1663 = vmatpush3.bf16.msra.mxu0 %v1713_v18 }
  0xf2   :  { %1679 = vmatpush3.bf16.msra.mxu1 %v1713_v18  ;;  %1664 = vmatprep.subr.bf16.mxu0 %v1713_v18 }
  0xf3   :  { %1680 = vmatprep.subr.bf16.mxu1 %v1713_v18 }
  0xf5   :  { %1665 = vmatpush3.bf16.msra.mxu0 %v1713_v18 }
  0xf6   :  { %1681 = vmatpush3.bf16.msra.mxu1 %v1713_v18  ;;  %1666 = vmatprep.subr.bf16.mxu0 %v1713_v18 }
  0xf7   :  { %1682 = vmatprep.subr.bf16.mxu1 %v1713_v18 }
  0xf9   :  { %1667 = vmatpush3.bf16.msra.mxu0 %v1713_v18 }
  0xfa   :  { %1683 = vmatpush3.bf16.msra.mxu1 %v1713_v18  ;;  %1668 = vmatprep.subr.bf16.mxu0 %v1713_v18 }
  0xfb   :  { %1684 = vmatprep.subr.bf16.mxu1 %v1713_v18 }
  0xfd   :  { %1669 = vmatpush3.bf16.msra.mxu0 %v1713_v18 }
  0xfe   :  { %1685 = vmatpush3.bf16.msra.mxu1 %v1713_v18  ;;  %1670 = vmatprep.subr.bf16.mxu0 %v1713_v18 }
  0xff   :  { %1686 = vmatprep.subr.bf16.mxu1 %v1713_v18 }
 0x101   :  { %1671 = vmatpush3.bf16.msra.mxu0 %v1713_v18 }
 0x102   :  { %1687 = vmatpush3.bf16.msra.mxu1 %v1713_v18 }
 0x1b7   :  { %v1516_v27 = vpop.f32.mrb[4].mxu0 }
 0x1b8   :  { %v1551_v28 = vpop.f32.mrb[4].mxu1  ;;  %v1517_v29 = vpop.f32.mrb[5].mxu0 }
 0x1b9   :  { %v1552_v30 = vpop.f32.mrb[5].mxu1  ;;  %v1518_v31 = vadd.f32 %v1517_v29, %v1516_v27 }
 0x1ba   :  { %v1553_v32 = vadd.f32 %v1552_v30, %v1551_v28 }
 0x1bc   :  { %v1273_v33 = vadd.f32 %v1553_v32, %v1518_v31 }
 0x1be   :  { %v1276_v34 = vmul.f32 0.001953125, %v1273_v33 }
 0x1c0   :  { %1279 = vperm.xlu0 %1691, %v1276_v34  }
 0x23f   :  { %v1280_v35 = vpop.permute.xlu0 %1279 }
 0x240   :  { %v1282_v36 = vsub.f32 %v127_v19, %v1280_v35  ;;  %v1283_v37 = vsub.f32 %v129_v21, %v1280_v35  ;;  %v1284_v38 = vsub.f32 %v168_v20, %v1280_v35  ;;  %v1285_v39 = vsub.f32 %v170_v22, %v1280_v35 }
 0x242   :  { %v1287_v40 = vmul.f32 %v1283_v37, %v1283_v37  ;;  %v1289_v41 = vmul.f32 %v1285_v39, %v1285_v39  ;;  %v1286_v42 = vmul.f32 %v1282_v36, %v1282_v36  ;;  %v1288_v43 = vmul.f32 %v1284_v38, %v1284_v38 }
 0x244   :  { %1354 = vmatprep.mubr.f32.mxu0 %v1287_v40  ;;  %1424 = vmatprep.mubr.f32.mxu1 %v1289_v41 }
 0x245   :  { %1355 = vmatmul.mubr.f32.vlgmr.msra.gmra.mrb[6].mxu0 %v1286_v42  ;;  %1425 = vmatmul.mubr.f32.vlgmr.msra.gmra.mrb[6].mxu1 %v1288_v43 }
 0x318   :  { %v1586_v46 = vpop.f32.mrb[6].mxu0  ;;  %v1621_v47 = vpop.f32.mrb[6].mxu1 }
 0x319   :  { %v1587_v48 = vpop.f32.mrb[7].mxu0  ;;  %v1622_v49 = vpop.f32.mrb[7].mxu1 }
 0x31a   :  { %v1588_v50 = vadd.f32 %v1587_v48, %v1586_v46  ;;  %v1623_v51 = vadd.f32 %v1622_v49, %v1621_v47 }
 0x31c   :  { %v1427_v52 = vadd.f32 %v1623_v51, %v1588_v50 }
 0x31e   :  { %v1430_v53 = vmul.f32 0.001953125, %v1427_v52 }
 0x320   :  { %v1432_v54 = vadd.f32 1e-05, %v1430_v53 }
 0x322   :  { %1710 = vrsqrt.f32 %v1432_v54 }
 0x32c   :  { %v1711_v55 = vpop.eup %1710 }
 0x32d   :  { %v1434_v56 = vmul.f32 %v1711_v55, %v1431_v44 }
 0x32f   :  { %1437 = vperm.xlu0 %1691, %v1434_v56  }
 0x333   :  { %1693 = vset.pattern.permute.xlu0 %v1714_v45 }
 0x3ae   :  { %v1438_v57 = vpop.permute.xlu0 %1437 }
 0x3af   :  { %v1440_v59 = vmul.f32 %v1438_v57, %v1282_v36  ;;  %v1441_v60 = vmul.f32 %v1438_v57, %v1283_v37  ;;  %v1442_v61 = vmul.f32 %v1438_v57, %v1284_v38  ;;  %v1443_v62 = vmul.f32 %v1438_v57, %v1285_v39 }
 0x3b1   :  { %v1449_v63 = vadd.f32 %v1447_v58, %v1440_v59  ;;  %v1450_v0 = vadd.f32 %v1447_v58, %v1441_v60  ;;  %v1451_v1 = vadd.f32 %v1447_v58, %v1442_v61  ;;  %v1452_v2 = vadd.f32 %v1447_v58, %v1443_v62 }
 0x3b3   :  { %v1453_v3 = vmax.f32 %v1449_v63, 0.0  ;;  %v1454_v4 = vmax.f32 %v1450_v0, 0.0  ;;  %v1455_v5 = vmax.f32 %v1451_v1, 0.0  ;;  %v1456_v6 = vmax.f32 %v1452_v2, 0.0 }
 0x3b5   :  { %1457 = vst [vmem:[%s1850_s3] sm:$0xff] %v1453_v3  ;;  %1458 = vst [vmem:[%s1850_s3 + $0x8] sm:$0xff] %v1454_v4 }
 0x3b6   :  { %1482 = vst [vmem:[%s1850_s3 + $0x10] sm:$0xff] %v1455_v5  ;;  %1483 = vst [vmem:[%s1850_s3 + $0x18] sm:$0xff] %v1456_v6 }

</bundles_post_ra>
